<compile_context>
chip_gen: v5e
topology: v5e:2x2
jax: 0.10.0
libtpu: 0.0.40
codegen_flags: <defaults>
</compile_context>

<pallas_src>
import functools

import numpy as np
import jax
import jax.numpy as jnp
from jax import lax
from jax.experimental import pallas as pl
from jax.experimental.pallas import tpu as pltpu

_LANE = 128
_CHUNK = 256  # rows per grid step: multiple of 8 sublanes, keeps the f32 accumulator small

# dilation schedule of the 19 lconvtwos / convtwos blocks (Orca 1Mb decoder)
DILATIONS = (1, 1, 1, 2, 4, 8, 16, 32, 64, 2, 4, 8, 16, 32, 64, 2, 4, 8, 16)


def _vmem_limit_bytes():
    # per-generation scoped-VMEM budget: <= 3/4 of physical VMEM, capped at 96 MiB
    try:
        cap = int(pltpu.get_tpu_info().vmem_capacity_bytes)
    except Exception:
        cap = 64 * 1024 * 1024
    return int(min(cap * 3 // 4, 96 * 1024 * 1024))


_VMEM_LIMIT = _vmem_limit_bytes()
_CPARAMS = pltpu.CompilerParams(
    dimension_semantics=("parallel",),
    vmem_limit_bytes=_VMEM_LIMIT,
)


def _round_up(v, m):
    return (v + m - 1) // m * m


def _pad_channels(c):
    # lane-dense output channel counts: 96 -> 128; small heads (<= 64) stay full-dim blocks
    if c <= 64 or c % _LANE == 0:
        return c
    return _round_up(c, _LANE)


# ----------------------------------------------------------------------------- kernels
def _conv1d_kernel(x_ref, w_ref, b_ref, s_ref, o_ref, *, ksize, relu):
    # x_ref: (chunk + ksize - 1, Cin) halo tile; w_ref: (ksize, Cin, Cout) bf16
    # b_ref: (1, Cout) f32; s_ref: (2, Cout) f32 = [scale; shift] (folded eval BatchNorm)
    # o_ref: (chunk, Cout) f32
    chunk, cout = o_ref.shape
    x = x_ref[...].astype(jnp.bfloat16)          # single cast, bf16 MXU operands
    w = w_ref[...]
    acc = jnp.zeros((chunk, cout), jnp.float32)
    for k in range(ksize):
        acc = acc + jnp.dot(x[k:k + chunk, :], w[k],
                            preferred_element_type=jnp.float32)
    acc = acc + b_ref[...]
    acc = acc * s_ref[0:1, :] + s_ref[1:2, :]
    if relu:
        acc = jnp.maximum(acc, 0.0)
    o_ref[...] = acc.astype(o_ref.dtype)


def _maxpool1d_kernel(x_ref, o_ref):
    # x_ref: (chunk, p, C); o_ref: (chunk, C)  -- MaxPool1d(kernel=stride=p)
    o_ref[...] = jnp.max(x_ref[...], axis=1)


def _conv2d_kernel(x_ref, w_ref, b_ref, s_ref, *rest, offs, relu, has_res):
    # x_ref: (H+2py, W+2px, Cin) zero-padded image; w_ref: (T, Cin, Cout) bf16
    # offs: static (row_off, col_off) per kept dilated tap; optional residual (H, W, Cout)
    if has_res:
        r_ref, o_ref = rest
    else:
        (o_ref,) = rest
    hh, ww, cout = o_ref.shape
    w = w_ref[...]                 # hoisted: loaded once per kernel invocation
    bias = b_ref[...]
    scale = s_ref[0:1, :]
    shift = s_ref[1:2, :]

    @pl.loop(0, hh)
    def _(y):
        acc = jnp.zeros((ww, cout), jnp.float32)
        for t, (oy, ox) in enumerate(offs):
            row = x_ref[y + oy]                             # (W + 2px, Cin), dynamic row
            seg = row[ox:ox + ww, :].astype(jnp.bfloat16)   # static column slice
            acc = acc + jnp.dot(seg, w[t], preferred_element_type=jnp.float32)
        acc = acc + bias
        acc = acc * scale + shift
        if relu:
            acc = jnp.maximum(acc, 0.0)
        if has_res:
            acc = acc + r_ref[y]
        o_ref[y] = acc.astype(o_ref.dtype)


# ----------------------------------------------------------------------------- wrappers
@functools.partial(jax.jit, static_argnames=("relu",))
def conv1d(x, w, b, scale=None, shift=None, *, relu=False):
    # x: (N, L, Cx) f32; w: PyTorch (Cout, Cin, K) with Cin <= Cx (extra x channels are 0)
    n, L, cx = x.shape
    cout, cin, kk = w.shape
    cop = _pad_channels(cout)

    wk = jnp.transpose(w, (2, 1, 0)).astype(jnp.float32)          # (K, Cin, Cout)
    wk = jnp.pad(wk, ((0, 0), (0, cx - cin), (0, cop - cout)))
    bk = jnp.pad(b.astype(jnp.float32), (0, cop - cout)).reshape(1, cop)
    if scale is None:
        scale = jnp.ones((cout,), jnp.float32)
    if shift is None:
        shift = jnp.zeros((cout,), jnp.float32)
    s = jnp.stack([jnp.pad(scale.astype(jnp.float32), (0, cop - cout)),
                   jnp.pad(shift.astype(jnp.float32), (0, cop - cout))], axis=0)

    x = x.astype(jnp.float32)
    # Small-contraction layer (first conv, Cin=4): fold the K taps into the channel dim so a
    # single K*Cin=36 contraction feeds the MXU instead of 9 depth-4 matmuls.
    if kk > 1 and cx * kk <= 64:
        pad = (kk - 1) // 2
        xp = jnp.pad(x, ((0, 0), (pad, pad), (0, 0)))
        x = jnp.concatenate([xp[:, k:k + L, :] for k in range(kk)], axis=-1)
        wk = wk.reshape(1, kk * cx, cop)
        cx = kk * cx
        kk = 1
    wk = wk.astype(jnp.bfloat16)

    chunk = min(_CHUNK, _round_up(L, 8))
    Lp = _round_up(L, chunk)
    T = Lp // chunk

    if kk == 1:
        xt = jnp.pad(x, ((0, 0), (0, Lp - L), (0, 0))) if Lp != L else x
        rows = chunk
        xt = xt.reshape(n * T, rows, cx)
    else:
        # halo tiles: tile t holds padded rows [t*chunk, t*chunk + chunk + K - 1)
        pad = (kk - 1) // 2
        xp = jnp.pad(x, ((0, 0), (pad, pad + (Lp - L)), (0, 0)))   # (N, Lp + K - 1, Cx)
        rows = chunk + kk - 1
        idx = (jnp.arange(T)[:, None] * chunk + jnp.arange(rows)[None, :]).reshape(-1)
        xt = jnp.take(xp, idx, axis=1).reshape(n * T, rows, cx)

    out = pl.pallas_call(
        functools.partial(_conv1d_kernel, ksize=kk, relu=relu),
        out_shape=jax.ShapeDtypeStruct((n * T, chunk, cop), jnp.float32),
        grid=(n * T,),
        in_specs=[pl.BlockSpec((None, rows, cx), lambda g: (g, 0, 0)),
                  pl.BlockSpec((kk, cx, cop), lambda g: (0, 0, 0)),
                  pl.BlockSpec((1, cop), lambda g: (0, 0)),
                  pl.BlockSpec((2, cop), lambda g: (0, 0))],
        out_specs=pl.BlockSpec((None, chunk, cop), lambda g: (g, 0, 0)),
        compiler_params=_CPARAMS,
    )(xt, wk, bk, s)
    out = out.reshape(n, Lp, cop)
    return out[:, :L, :] if Lp != L else out


@functools.partial(jax.jit, static_argnames=("p",))
def maxpool1d(x, *, p):
    # x: (N, L, C); MaxPool1d(kernel=stride=p).  No wrapper transpose: free reshape only.
    n, L, c = x.shape
    lo = L // p
    xr = x.astype(jnp.float32).reshape(n, lo, p, c)
    chunk = min(_CHUNK, _round_up(lo, 8))
    lop = _round_up(lo, chunk)
    if lop != lo:
        xr = jnp.pad(xr, ((0, 0), (0, lop - lo), (0, 0), (0, 0)))
    T = lop // chunk
    xr = xr.reshape(n * T, chunk, p, c)
    out = pl.pallas_call(
        _maxpool1d_kernel,
        out_shape=jax.ShapeDtypeStruct((n * T, chunk, c), jnp.float32),
        grid=(n * T,),
        in_specs=[pl.BlockSpec((None, chunk, p, c), lambda g: (g, 0, 0, 0))],
        out_specs=pl.BlockSpec((None, chunk, c), lambda g: (g, 0, 0)),
        compiler_params=_CPARAMS,
    )(xr)
    out = out.reshape(n, lop, c)
    return out[:, :lo, :] if lop != lo else out


@functools.partial(jax.jit, static_argnames=("dil", "relu"))
def conv2d(x, w, b, scale=None, shift=None, residual=None, *, dil=1, relu=False):
    # x: NHWC; w: PyTorch (Cout, Cin, K, K); 'same' padding = dil*(K//2).
    # Optional fused residual add (added after the epilogue, like `conv(x) + residual`).
    n, hh, ww, cx = x.shape
    cout, cin, kk, _ = w.shape
    half = kk // 2

    # keep only taps that can touch real data; taps entirely in the zero padding are exact 0
    taps = []
    for a in range(kk):
        for bb in range(kk):
            dy, dx = (a - half) * dil, (bb - half) * dil
            if abs(dy) < hh and abs(dx) < ww:
                taps.append((a, bb, dy, dx))
    py = max(abs(t[2]) for t in taps)
    px = max(abs(t[3]) for t in taps)
    offs = tuple((dy + py, dx + px) for (_, _, dy, dx) in taps)

    xp = jnp.pad(x.astype(jnp.float32), ((0, 0), (py, py), (px, px), (0, 0)))
    wk = jnp.transpose(w, (2, 3, 1, 0)).astype(jnp.float32)            # (K, K, Cin, Cout)
    wt = jnp.stack([wk[a, bb] for (a, bb, _, _) in taps], axis=0)      # (T, Cin, Cout)
    wt = jnp.pad(wt, ((0, 0), (0, cx - cin), (0, 0))).astype(jnp.bfloat16)
    bk = b.reshape(1, cout).astype(jnp.float32)
    if scale is None:
        scale = jnp.ones((cout,), jnp.float32)
    if shift is None:
        shift = jnp.zeros((cout,), jnp.float32)
    s = jnp.stack([scale, shift], axis=0).astype(jnp.float32)

    has_res = residual is not None
    in_specs = [pl.BlockSpec((None, hh + 2 * py, ww + 2 * px, cx), lambda g: (g, 0, 0, 0)),
                pl.BlockSpec((len(taps), cx, cout), lambda g: (0, 0, 0)),
                pl.BlockSpec((1, cout), lambda g: (0, 0)),
                pl.BlockSpec((2, cout), lambda g: (0, 0))]
    args = [xp, wt, bk, s]
    if has_res:
        in_specs.append(pl.BlockSpec((None, hh, ww, cout), lambda g: (g, 0, 0, 0)))
        args.append(residual.astype(jnp.float32))

    return pl.pallas_call(
        functools.partial(_conv2d_kernel, offs=offs, relu=relu, has_res=has_res),
        out_shape=jax.ShapeDtypeStruct((n, hh, ww, cout), jnp.float32),
        grid=(n,),
        in_specs=in_specs,
        out_specs=pl.BlockSpec((None, hh, ww, cout), lambda g: (g, 0, 0, 0)),
        compiler_params=_CPARAMS,
    )(*args)


# ----------------------------------------------------------------------------- params
def init_params(key):
    keys = iter(jax.random.split(key, 1024))

    def conv(cout, cin, *ks):
        fan = cin * int(np.prod(ks))
        w = jax.random.normal(next(keys), (cout, cin) + tuple(ks), jnp.float32) / np.sqrt(fan)
        b = 0.01 * jax.random.normal(next(keys), (cout,), jnp.float32)
        return {"w": w, "b": b}

    def bn(c, eps=1e-5):
        gamma = 1.0 + 0.05 * jax.random.normal(next(keys), (c,), jnp.float32)
        beta = 0.05 * jax.random.normal(next(keys), (c,), jnp.float32)
        mean = jnp.zeros((c,), jnp.float32)      # eval-mode running stats
        var = jnp.ones((c,), jnp.float32)
        scale = gamma / jnp.sqrt(var + eps)
        shift = beta - mean * scale
        return {"scale": scale, "shift": shift}

    p = {}
    p["lconv1"] = [conv(64, 4, 9), conv(64, 64, 9)]
    p["conv1"] = [conv(64, 64, 9), conv(64, 64, 9)]
    p["lconv2"] = [conv(96, 64, 9), conv(96, 96, 9)]
    p["conv2"] = [conv(96, 96, 9), conv(96, 96, 9)]
    p["lconv3"] = [conv(128, 96, 9), conv(128, 128, 9)]
    p["conv3"] = [conv(128, 128, 9), conv(128, 128, 9)]
    for i in (4, 5, 6, 7):
        p[f"lconv{i}"] = [conv(128, 128, 9), conv(128, 128, 9)]
        p[f"conv{i}"] = [conv(128, 128, 9), conv(128, 128, 9)]
    p["lconvtwos"], p["convtwos"] = [], []
    for i, _d in enumerate(DILATIONS):
        cin0 = 128 if i == 0 else 64
        p["lconvtwos"].append([conv(32, cin0, 3, 3), conv(64, 32, 3, 3)])
        p["convtwos"].append([conv(32, 64, 3, 3), bn(32), conv(64, 32, 3, 3), bn(64)])
    p["final"] = [conv(5, 64, 1, 1), bn(5), conv(1, 5, 1, 1)]
    p["final_1d"] = [conv(128, 128, 1), bn(128), conv(32, 128, 1)]
    return p


# ----------------------------------------------------------------------------- forward
def net_forward(params, x):
    # x: (N, 4, L) in PyTorch NCL convention
    h = jnp.transpose(x, (0, 2, 1)).astype(jnp.float32)           # -> (N, L, C)

    def lblock(h, blocks, pool=None):
        if pool is not None:
            h = maxpool1d(h, p=pool)
        for blk in blocks:
            h = conv1d(h, blk["w"], blk["b"])
        return h

    def cblock(h, blocks):
        for blk in blocks:
            h = conv1d(h, blk["w"], blk["b"], relu=True)
        return h

    lout1 = lblock(h, params["lconv1"])
    out1 = cblock(lout1, params["conv1"])
    lout2 = lblock(out1 + lout1, params["lconv2"], pool=4)
    out2 = cblock(lout2, params["conv2"])
    lout3 = lblock(out2 + lout2, params["lconv3"], pool=4)
    out3 = cblock(lout3, params["conv3"])
    lout4 = lblock(out3 + lout3, params["lconv4"], pool=5)
    out4 = cblock(lout4, params["conv4"])
    lout5 = lblock(out4 + lout4, params["lconv5"], pool=5)
    out5 = cblock(lout5, params["conv5"])
    lout6 = lblock(out5 + lout5, params["lconv6"], pool=5)
    out6 = cblock(lout6, params["conv6"])
    lout7 = lblock(out6 + lout6, params["lconv7"], pool=2)
    out7 = cblock(lout7, params["conv7"])                          # (N, S, 128)

    # final_1d head (computed by Net, discarded by H1esc_1M.forward)
    f1 = params["final_1d"]
    o1 = conv1d(out7, f1[0]["w"], f1[0]["b"], f1[1]["scale"], f1[1]["shift"], relu=True)
    o1 = conv1d(o1, f1[2]["w"], f1[2]["b"])
    output1d = jnp.transpose(o1, (0, 2, 1))                        # (N, 32, S) like PyTorch

    # mat = out7[:, :, :, None] + out7[:, :, None, :]   (here in NHWC)
    cur = out7[:, :, None, :] + out7[:, None, :, :]                # (N, S, S, 128)

    def ltwo(cur, blk, d, first):
        # Dropout(p=0.1) in the first lconvtwos block is identity in eval mode.
        y = conv2d(cur, blk[0]["w"], blk[0]["b"], dil=d)
        return conv2d(y, blk[1]["w"], blk[1]["b"],
                      residual=None if first else cur, dil=d)

    def ctwo(cur, blk, d):
        y = conv2d(cur, blk[0]["w"], blk[0]["b"], blk[1]["scale"], blk[1]["shift"],
                   dil=d, relu=True)
        return conv2d(y, blk[2]["w"], blk[2]["b"], blk[3]["scale"], blk[3]["shift"],
                      residual=cur, dil=d, relu=True)

    for i, d in enumerate(DILATIONS):
        cur = ltwo(cur, params["lconvtwos"][i], d, first=(i == 0))
        cur = ctwo(cur, params["convtwos"][i], d)

    f = params["final"]
    cur = conv2d(cur, f[0]["w"], f[0]["b"], f[1]["scale"], f[1]["shift"], relu=True)  # 1x1
    cur = conv2d(cur, f[2]["w"], f[2]["b"])                                            # 1x1
    cur = 0.5 * (cur + jnp.transpose(cur, (0, 2, 1, 3)))           # symmetrize
    pred = jnp.transpose(cur, (0, 3, 1, 2))                        # NCHW (N, 1, S, S)
    return pred, output1d


def h1esc_1m_forward(params, x):
    pred, _ = net_forward(params, x)   # H1esc_1M.forward returns only pred
    return pred


# ----------------------------------------------------------------------------- checks
def _self_check(key):
    ks = jax.random.split(key, 8)

    # conv1d (halo-tile path, Cin=128, K=9) vs lax reference
    x = jax.random.normal(ks[0], (2, 40, 128), jnp.float32)
    w = jax.random.normal(ks[1], (128, 128, 9), jnp.float32) / np.sqrt(128 * 9)
    b = 0.01 * jax.random.normal(ks[2], (128,), jnp.float32)
    got = conv1d(x, w, b, relu=True)
    ref = lax.conv_general_dilated(
        x, jnp.transpose(w, (2, 1, 0)), (1,), [(4, 4)],
        dimension_numbers=("NWC", "WIO", "NWC"),
        precision=lax.Precision.HIGHEST) + b[None, None, :]
    ref = jnp.maximum(ref, 0.0)
    np.testing.assert_allclose(np.asarray(got), np.asarray(ref), rtol=5e-2, atol=5e-2)

    # conv1d (folded small-Cin path, Cin=4, K=9) vs lax reference
    x4 = jax.random.normal(ks[3], (2, 70, 4), jnp.float32)
    w4 = jax.random.normal(ks[4], (64, 4, 9), jnp.float32) / 6.0
    b4 = 0.01 * jax.random.normal(ks[5], (64,), jnp.float32)
    got4 = conv1d(x4, w4, b4)
    ref4 = lax.conv_general_dilated(
        x4, jnp.transpose(w4, (2, 1, 0)), (1,), [(4, 4)],
        dimension_numbers=("NWC", "WIO", "NWC"),
        precision=lax.Precision.HIGHEST) + b4[None, None, :]
    np.testing.assert_allclose(np.asarray(got4), np.asarray(ref4), rtol=5e-2, atol=5e-2)

    # dilated conv2d (+ fused residual) vs lax reference
    x2 = jax.random.normal(ks[6], (2, 4, 4, 64), jnp.float32)
    w2 = jax.random.normal(ks[7], (32, 64, 3, 3), jnp.float32) / np.sqrt(64 * 9)
    b2 = jnp.zeros((32,), jnp.float32)
    r2 = jnp.ones((2, 4, 4, 32), jnp.float32)
    got2 = conv2d(x2, w2, b2, residual=r2, dil=2)
    ref2 = lax.conv_general_dilated(
        x2, jnp.transpose(w2, (2, 3, 1, 0)), (1, 1), [(2, 2), (2, 2)],
        rhs_dilation=(2, 2), dimension_numbers=("NHWC", "HWIO", "NHWC"),
        precision=lax.Precision.HIGHEST) + r2
    np.testing.assert_allclose(np.asarray(got2), np.asarray(ref2), rtol=5e-2, atol=5e-2)

    # maxpool kernel vs reference
    got3 = maxpool1d(x, p=5)
    ref3 = jnp.max(x.reshape(2, 8, 5, 128), axis=2)
    np.testing.assert_allclose(np.asarray(got3), np.asarray(ref3), rtol=0, atol=1e-6)


# ----------------------------------------------------------------------------- main
if __name__ == "__main__":
    root = jax.random.PRNGKey(0)
    kp, kx, kc = jax.random.split(root, 3)
    params = init_params(kp)
    _self_check(kc)

    # Encoder downsamples by 4*4*5*5*5*2 = 4000 (real model: 1_000_000 bp -> 250 bins).
    # Small demo: L0 = 16000 -> 4x4 contact-map prediction.
    N, S = 2, 4
    L0 = 4000 * S
    tokens = jax.random.randint(kx, (N, L0), 0, 4)
    x = jnp.transpose(jax.nn.one_hot(tokens, 4, dtype=jnp.float32), (0, 2, 1))  # (N, 4, L0)

    pred = h1esc_1m_forward(params, x)
    pred = jax.block_until_ready(pred)
    assert pred.shape == (N, 1, S, S), pred.shape
    assert bool(jnp.all(jnp.isfinite(pred)))
    print("KERNEL_OK")
</pallas_src>

<mosaic_0001>
module attributes {stable_mosaic.version = 11 : i64} {
  func.func @_conv1d_kernel(%arg0: i32, %arg1: memref<1x48x128xf32, #tpu.memory_space<vmem>>, %arg2: memref<9x128x128xbf16, #tpu.memory_space<vmem>>, %arg3: memref<1x128xf32, #tpu.memory_space<vmem>>, %arg4: memref<2x128xf32, #tpu.memory_space<vmem>>, %arg5: memref<1x40x128xf32, #tpu.memory_space<vmem>>) attributes {dimension_semantics = [#tpu.dimension_semantics<parallel>], iteration_bounds = array<i64: 2>, scalar_prefetch = 0 : i64, scratch_operands = 0 : i64, tpu.core_type = #tpu.core_type<tc>, window_params = [{transform_indices = @transform_0, window_bounds = array<i64: 1, 48, 128>}, {pipeline_mode = #tpu.pipeline_mode<synchronous>, transform_indices = @transform_1, window_bounds = array<i64: 9, 128, 128>}, {pipeline_mode = #tpu.pipeline_mode<synchronous>, transform_indices = @transform_2, window_bounds = array<i64: 1, 128>}, {pipeline_mode = #tpu.pipeline_mode<synchronous>, transform_indices = @transform_3, window_bounds = array<i64: 2, 128>}, {transform_indices = @transform_4, window_bounds = array<i64: 1, 40, 128>}]} {
    %c0 = arith.constant 0 : index
    %c0_0 = arith.constant 0 : index
    %c0_1 = arith.constant 0 : index
    %0 = vector.load %arg1[%c0, %c0_0, %c0_1] : memref<1x48x128xf32, #tpu.memory_space<vmem>>, vector<1x48x128xf32>
    %1 = vector.shape_cast %0 : vector<1x48x128xf32> to vector<48x128xf32>
    %2 = arith.truncf %1 : vector<48x128xf32> to vector<48x128xbf16>
    %c0_2 = arith.constant 0 : index
    %c0_3 = arith.constant 0 : index
    %c0_4 = arith.constant 0 : index
    %3 = vector.load %arg2[%c0_2, %c0_3, %c0_4] : memref<9x128x128xbf16, #tpu.memory_space<vmem>>, vector<9x128x128xbf16>
    %cst = arith.constant 0.000000e+00 : f32
    %4 = vector.broadcast %cst : f32 to vector<40x128xf32>
    %5 = vector.extract_strided_slice %2 {offsets = [0, 0], sizes = [40, 128], strides = [1, 1]} : vector<48x128xbf16> to vector<40x128xbf16>
    %6 = vector.extract_strided_slice %3 {offsets = [0, 0, 0], sizes = [1, 128, 128], strides = [1, 1, 1]} : vector<9x128x128xbf16> to vector<1x128x128xbf16>
    %7 = vector.shape_cast %6 : vector<1x128x128xbf16> to vector<128x128xbf16>
    %cst_5 = arith.constant dense<0.000000e+00> : vector<40x128xf32>
    %8 = tpu.matmul %5, %7, %cst_5 {dimension_numbers = #tpu.dot_dimension_numbers<[1], [0], [0], [1], [0, 0, 1, 1], [], []>} : vector<40x128xbf16>, vector<128x128xbf16>, vector<40x128xf32> -> vector<40x128xf32>
    %9 = arith.addf %4, %8 : vector<40x128xf32>
    %10 = vector.extract_strided_slice %2 {offsets = [1, 0], sizes = [40, 128], strides = [1, 1]} : vector<48x128xbf16> to vector<40x128xbf16>
    %11 = vector.extract_strided_slice %3 {offsets = [1, 0, 0], sizes = [1, 128, 128], strides = [1, 1, 1]} : vector<9x128x128xbf16> to vector<1x128x128xbf16>
    %12 = vector.shape_cast %11 : vector<1x128x128xbf16> to vector<128x128xbf16>
    %cst_6 = arith.constant dense<0.000000e+00> : vector<40x128xf32>
    %13 = tpu.matmul %10, %12, %cst_6 {dimension_numbers = #tpu.dot_dimension_numbers<[1], [0], [0], [1], [0, 0, 1, 1], [], []>} : vector<40x128xbf16>, vector<128x128xbf16>, vector<40x128xf32> -> vector<40x128xf32>
    %14 = arith.addf %9, %13 : vector<40x128xf32>
    %15 = vector.extract_strided_slice %2 {offsets = [2, 0], sizes = [40, 128], strides = [1, 1]} : vector<48x128xbf16> to vector<40x128xbf16>
    %16 = vector.extract_strided_slice %3 {offsets = [2, 0, 0], sizes = [1, 128, 128], strides = [1, 1, 1]} : vector<9x128x128xbf16> to vector<1x128x128xbf16>
    %17 = vector.shape_cast %16 : vector<1x128x128xbf16> to vector<128x128xbf16>
    %cst_7 = arith.constant dense<0.000000e+00> : vector<40x128xf32>
    %18 = tpu.matmul %15, %17, %cst_7 {dimension_numbers = #tpu.dot_dimension_numbers<[1], [0], [0], [1], [0, 0, 1, 1], [], []>} : vector<40x128xbf16>, vector<128x128xbf16>, vector<40x128xf32> -> vector<40x128xf32>
    %19 = arith.addf %14, %18 : vector<40x128xf32>
    %20 = vector.extract_strided_slice %2 {offsets = [3, 0], sizes = [40, 128], strides = [1, 1]} : vector<48x128xbf16> to vector<40x128xbf16>
    %21 = vector.extract_strided_slice %3 {offsets = [3, 0, 0], sizes = [1, 128, 128], strides = [1, 1, 1]} : vector<9x128x128xbf16> to vector<1x128x128xbf16>
    %22 = vector.shape_cast %21 : vector<1x128x128xbf16> to vector<128x128xbf16>
    %cst_8 = arith.constant dense<0.000000e+00> : vector<40x128xf32>
    %23 = tpu.matmul %20, %22, %cst_8 {dimension_numbers = #tpu.dot_dimension_numbers<[1], [0], [0], [1], [0, 0, 1, 1], [], []>} : vector<40x128xbf16>, vector<128x128xbf16>, vector<40x128xf32> -> vector<40x128xf32>
    %24 = arith.addf %19, %23 : vector<40x128xf32>
    %25 = vector.extract_strided_slice %2 {offsets = [4, 0], sizes = [40, 128], strides = [1, 1]} : vector<48x128xbf16> to vector<40x128xbf16>
    %26 = vector.extract_strided_slice %3 {offsets = [4, 0, 0], sizes = [1, 128, 128], strides = [1, 1, 1]} : vector<9x128x128xbf16> to vector<1x128x128xbf16>
    %27 = vector.shape_cast %26 : vector<1x128x128xbf16> to vector<128x128xbf16>
    %cst_9 = arith.constant dense<0.000000e+00> : vector<40x128xf32>
    %28 = tpu.matmul %25, %27, %cst_9 {dimension_numbers = #tpu.dot_dimension_numbers<[1], [0], [0], [1], [0, 0, 1, 1], [], []>} : vector<40x128xbf16>, vector<128x128xbf16>, vector<40x128xf32> -> vector<40x128xf32>
    %29 = arith.addf %24, %28 : vector<40x128xf32>
    %30 = vector.extract_strided_slice %2 {offsets = [5, 0], sizes = [40, 128], strides = [1, 1]} : vector<48x128xbf16> to vector<40x128xbf16>
    %31 = vector.extract_strided_slice %3 {offsets = [5, 0, 0], sizes = [1, 128, 128], strides = [1, 1, 1]} : vector<9x128x128xbf16> to vector<1x128x128xbf16>
    %32 = vector.shape_cast %31 : vector<1x128x128xbf16> to vector<128x128xbf16>
    %cst_10 = arith.constant dense<0.000000e+00> : vector<40x128xf32>
    %33 = tpu.matmul %30, %32, %cst_10 {dimension_numbers = #tpu.dot_dimension_numbers<[1], [0], [0], [1], [0, 0, 1, 1], [], []>} : vector<40x128xbf16>, vector<128x128xbf16>, vector<40x128xf32> -> vector<40x128xf32>
    %34 = arith.addf %29, %33 : vector<40x128xf32>
    %35 = vector.extract_strided_slice %2 {offsets = [6, 0], sizes = [40, 128], strides = [1, 1]} : vector<48x128xbf16> to vector<40x128xbf16>
    %36 = vector.extract_strided_slice %3 {offsets = [6, 0, 0], sizes = [1, 128, 128], strides = [1, 1, 1]} : vector<9x128x128xbf16> to vector<1x128x128xbf16>
    %37 = vector.shape_cast %36 : vector<1x128x128xbf16> to vector<128x128xbf16>
    %cst_11 = arith.constant dense<0.000000e+00> : vector<40x128xf32>
    %38 = tpu.matmul %35, %37, %cst_11 {dimension_numbers = #tpu.dot_dimension_numbers<[1], [0], [0], [1], [0, 0, 1, 1], [], []>} : vector<40x128xbf16>, vector<128x128xbf16>, vector<40x128xf32> -> vector<40x128xf32>
    %39 = arith.addf %34, %38 : vector<40x128xf32>
    %40 = vector.extract_strided_slice %2 {offsets = [7, 0], sizes = [40, 128], strides = [1, 1]} : vector<48x128xbf16> to vector<40x128xbf16>
    %41 = vector.extract_strided_slice %3 {offsets = [7, 0, 0], sizes = [1, 128, 128], strides = [1, 1, 1]} : vector<9x128x128xbf16> to vector<1x128x128xbf16>
    %42 = vector.shape_cast %41 : vector<1x128x128xbf16> to vector<128x128xbf16>
    %cst_12 = arith.constant dense<0.000000e+00> : vector<40x128xf32>
    %43 = tpu.matmul %40, %42, %cst_12 {dimension_numbers = #tpu.dot_dimension_numbers<[1], [0], [0], [1], [0, 0, 1, 1], [], []>} : vector<40x128xbf16>, vector<128x128xbf16>, vector<40x128xf32> -> vector<40x128xf32>
    %44 = arith.addf %39, %43 : vector<40x128xf32>
    %45 = vector.extract_strided_slice %2 {offsets = [8, 0], sizes = [40, 128], strides = [1, 1]} : vector<48x128xbf16> to vector<40x128xbf16>
    %46 = vector.extract_strided_slice %3 {offsets = [8, 0, 0], sizes = [1, 128, 128], strides = [1, 1, 1]} : vector<9x128x128xbf16> to vector<1x128x128xbf16>
    %47 = vector.shape_cast %46 : vector<1x128x128xbf16> to vector<128x128xbf16>
    %cst_13 = arith.constant dense<0.000000e+00> : vector<40x128xf32>
    %48 = tpu.matmul %45, %47, %cst_13 {dimension_numbers = #tpu.dot_dimension_numbers<[1], [0], [0], [1], [0, 0, 1, 1], [], []>} : vector<40x128xbf16>, vector<128x128xbf16>, vector<40x128xf32> -> vector<40x128xf32>
    %49 = arith.addf %44, %48 : vector<40x128xf32>
    %c0_14 = arith.constant 0 : index
    %c0_15 = arith.constant 0 : index
    %50 = vector.load %arg3[%c0_14, %c0_15] : memref<1x128xf32, #tpu.memory_space<vmem>>, vector<1x128xf32>
    %51 = vector.broadcast %50 : vector<1x128xf32> to vector<40x128xf32>
    %52 = arith.addf %49, %51 : vector<40x128xf32>
    %c0_16 = arith.constant 0 : index
    %c0_17 = arith.constant 0 : index
    %53 = vector.load %arg4[%c0_16, %c0_17] : memref<2x128xf32, #tpu.memory_space<vmem>>, vector<1x128xf32>
    %54 = vector.broadcast %53 : vector<1x128xf32> to vector<40x128xf32>
    %55 = arith.mulf %52, %54 : vector<40x128xf32>
    %c1 = arith.constant 1 : index
    %c0_18 = arith.constant 0 : index
    %56 = vector.load %arg4[%c1, %c0_18] : memref<2x128xf32, #tpu.memory_space<vmem>>, vector<1x128xf32>
    %57 = vector.broadcast %56 : vector<1x128xf32> to vector<40x128xf32>
    %58 = arith.addf %55, %57 : vector<40x128xf32>
    %cst_19 = arith.constant 0.000000e+00 : f32
    %59 = vector.broadcast %cst_19 : f32 to vector<40x128xf32>
    %60 = arith.maximumf %58, %59 : vector<40x128xf32>
    %c0_20 = arith.constant 0 : index
    %c0_21 = arith.constant 0 : index
    %c0_22 = arith.constant 0 : index
    %61 = vector.load %arg5[%c0_20, %c0_21, %c0_22] : memref<1x40x128xf32, #tpu.memory_space<vmem>>, vector<1x40x128xf32>
    %62 = vector.shape_cast %61 : vector<1x40x128xf32> to vector<40x128xf32>
    %63 = vector.shape_cast %60 : vector<40x128xf32> to vector<1x40x128xf32>
    tpu.vector_store %arg5[%c0_20, %c0_21, %c0_22], %63 {strides = array<i32>} : memref<1x40x128xf32, #tpu.memory_space<vmem>>, vector<1x40x128xf32>,
    return
  }
  func.func @transform_0(%arg0: i32) -> (i32, i32, i32) {
    %c0_i32 = arith.constant 0 : i32
    %c0_i32_0 = arith.constant 0 : i32
    %c0_i32_1 = arith.constant 0 : i32
    return %arg0, %c0_i32, %c0_i32_0 : i32, i32, i32
  }
  func.func @transform_1(%arg0: i32) -> (i32, i32, i32) {
    %c0_i32 = arith.constant 0 : i32
    %c0_i32_0 = arith.constant 0 : i32
    %c0_i32_1 = arith.constant 0 : i32
    %c0_i32_2 = arith.constant 0 : i32
    return %c0_i32, %c0_i32_0, %c0_i32_1 : i32, i32, i32
  }
  func.func @transform_2(%arg0: i32) -> (i32, i32) {
    %c0_i32 = arith.constant 0 : i32
    %c0_i32_0 = arith.constant 0 : i32
    %c0_i32_1 = arith.constant 0 : i32
    return %c0_i32, %c0_i32_0 : i32, i32
  }
  func.func @transform_3(%arg0: i32) -> (i32, i32) {
    %c0_i32 = arith.constant 0 : i32
    %c0_i32_0 = arith.constant 0 : i32
    %c0_i32_1 = arith.constant 0 : i32
    return %c0_i32, %c0_i32_0 : i32, i32
  }
  func.func @transform_4(%arg0: i32) -> (i32, i32, i32) {
    %c0_i32 = arith.constant 0 : i32
    %c0_i32_0 = arith.constant 0 : i32
    %c0_i32_1 = arith.constant 0 : i32
    return %arg0, %c0_i32, %c0_i32_0 : i32, i32, i32
  }
}

</mosaic_0001>

<bundles_post_ra>
// kernel: conv1d.1
= control target key start
LH: loop header
LB: loop body
LE: loop exit
PB: predicated region body
PF: predicated region fallthrough
CT: control target
= control target key end

     0   :  { %9 = vsyncpa [#allocation3], 0  ;;  %s2235_s0 = inlined_call_operand.vmem [shape: f32[2,48,128], index: 0, kind: input, shape index: {}]   ;;  %s2236_s1 = inlined_call_operand.vmem [shape: bf16[9,128,128], index: 1, kind: input, shape index: {}]   ;;  %s2237_s2 = inlined_call_operand.vmem [shape: f32[1,128], index: 2, kind: input, shape index: {}]   ;;  %s2238_s3 = inlined_call_operand.vmem [shape: f32[2,128], index: 3, kind: input, shape index: {}]   ;;  %s2239_s4 = inlined_call_operand.hbm [shape: f32[2,40,128], index: 4, kind: output, shape index: {}]  }
   0x1   :  { %11 = vsyncpa [#allocation3 + $0x1], 0  ;;  %s1783_s15 = smov 0   ;;  %s1785_s16 = smov 0  }
   0x2   :  { %s1787_s17 = smov 0   ;;  %s1789_s18 = smov 0  }
   0x3 LB: > { %s1804_s19 = sadd.s32 4294967295, %s1754_s18   ;;  %s1261_s20 = sadd.s32 4294967294, %s1754_s18   ;;  %s1754_s18 = sphi %s1789_s18, %s2245_s18   ;;  %s1750_s17 = sphi %s1787_s17, %s2244_s17   ;;  %s1746_s16 = sphi %s1785_s16, %s2243_s16   ;;  %s1742_s15 = sphi %s1783_s15, %s2242_s15  }
   0x4   : > { %s1808_s21 = sadd.s32 1, %s1754_s18   ;;  %s113_s22 = sadd.s32 1, %s1750_s17 }
   0x5   : > { %s110_s23 = ssub.s32 %s1754_s18, %s1808_s21  ;;  %p123_p0 = scmp.ne.s32.totalorder %s1750_s17, %s1746_s16 }
   0x6   : > { %p111_p1 = scmp.eq.s32.totalorder %s110_s23, 0  ;;  %p124_p2 = scmp.eq.s32.totalorder %s1804_s19, 1 }
   0x7   : > { %p129_p3 = scmp.ne.s32.totalorder %s1746_s16, %s1742_s15  ;;  %p130_p4 = scmp.eq.s32.totalorder %s1261_s20, 1 }
   0x8   : > { %s1819_s24 = scalar_select %p111_p1, %s1750_s17, %s113_s22  }
   0x9   : > { %p1821_p5 = por %p124_p2, %p123_p0  ;;  %p1825_p6 = por %p130_p4, %p129_p3 }
   0xa   : > { %p1264_p7 = scmp.ge.s32.totalorder %s1754_s18, 1  ;;  %p165_p8 = scmp.lt.s32.totalorder %s1754_s18, 3 }
   0xc   : > { %p166_p9 = pnand %p1264_p7, %p165_p8 }
   0xd   : > { %p191_p10 = scmp.lt.s32.totalorder (!%p166_p9), %s1804_s19, 1  ;;  %s188_s22 = sand.u32 (!%p166_p9), 1, %s1746_s16  }
   0xe   : > { %169 = sbr.rel (%p166_p9) target bundleno = 309 (0x135), region = 36  ;;  %s1184_s11 = scalar_lea.sflag (!%p166_p9), [#allocation3], %s188_s22 }
   0xf   : > { %s1645_s30 = smul.u32 (!%p166_p9), 40, %s188_s22  ;;  %s1712_s23 = scalar_lea.hbm (!%p166_p9), %s2239_s4, 80 }
  0x10   : > { %s1647_s6 = smul.u32 (!%p166_p9), 40, %s1804_s19 }
  0x11   : > { %s2179_s5 = scalar_lea.vmem (!%p166_p9), [#allocation2], %s1645_s30 }
  0x12   : > { %s1195_s9 = scalar_lea.hbm (!%p166_p9), %s2239_s4, %s1647_s6  ;;  %s1196_s10 = sshll.u32 (!%p166_p9), %s2179_s5, 4  ;;  %s1197_s10 = int_to_ptr.vmem [resolvable:$true] %s1196_s10 }
  0x13   : > { %v1572_v0 = vld [vmem:[%s2236_s1 + $0x78] sm:$0xff]  ;;  %v1571_v2 = vld [vmem:[%s2236_s1 + $0x70] sm:$0xff]  ;;  %s192_s7 = scalar_select %p191_p10, %s1804_s19, 1  ;;  %v1570_v6 = vld [vmem:[%s2236_s1 + $0x68] sm:$0xff]  ;;  %vm367_vm0 = vsmask.f32 7424 }
  0x14   : > { %v1580_v1 = vld [vmem:[%s2236_s1 + $0xb8] sm:$0xff]  ;;  %1629 = vmatpush.bf16.msra.mxu1 %v1572_v0  ;;  %442 = vmatpush.bf16.msra.mxu0 %v1572_v0  ;;  %v1579_v3 = vld [vmem:[%s2236_s1 + $0xb0] sm:$0xff]  ;;  %v1578_v7 = vld [vmem:[%s2236_s1 + $0xa8] sm:$0xff]  ;;  %vm540_vm1 = vcmask 1046528   ;;  %vm625_vm2 = vsmask.f32 6400 }
  0x15   : > { %597 = vmatpush.bf16.msra.mxu2 %v1580_v1  ;;  %v1588_v4 = vld [vmem:[%s2236_s1 + $0xf8] sm:$0xff]  ;;  %s1646_s12 = smul.u32 48, %s192_s7  ;;  %v1587_v5 = vld [vmem:[%s2236_s1 + $0xf0] sm:$0xff]  ;;  %v1586_v14 = vld [vmem:[%s2236_s1 + $0xe8] sm:$0xff]  ;;  %vm716_vm3 = vcmask 1045504   ;;  %vm892_vm5 = vcmask 1044480  }
  0x16   : > { %688 = vmatpush.bf16.msra.mxu3 %v1588_v4  ;;  %v1569_v19 = vld [vmem:[%s2236_s1 + $0x60] sm:$0xff]  ;;  %v1568_v30 = vld [vmem:[%s2236_s1 + $0x58] sm:$0xff]  ;;  %v1567_v36 = vld [vmem:[%s2236_s1 + $0x50] sm:$0xff]  ;;  %vm801_vm4 = vsmask.f32 5376  ;;  %s1198_s19 = sshll.u32 %s1195_s9, 4  ;;  %s1199_s19 = int_to_ptr.hbm [resolvable:$true] %s1198_s19 }
  0x17   : > { %s195_s28 = scalar_lea.vmem %s2235_s0, %s1646_s12  ;;  %v1577_v24 = vld [vmem:[%s2236_s1 + $0xa0] sm:$0xff]  ;;  %v1576_v32 = vld [vmem:[%s2236_s1 + $0x98] sm:$0xff]  ;;  %v1575_v38 = vld [vmem:[%s2236_s1 + $0x90] sm:$0xff]  ;;  %vm977_vm6 = vsmask.f32 4352  ;;  %s1706_s12 = sshra.s32 %s1199_s19, 4  ;;  %s1707_s12 = int_to_ptr.hbm [resolvable:$true] %s1706_s12 }
  0x18   : > { %1630 = vmatpush.bf16.msra.mxu1 %v1571_v2  ;;  %443 = vmatpush.bf16.msra.mxu0 %v1571_v2  ;;  %v196_v8 = vld [vmem:[%s195_s28] sm:$0xff]  ;;  %v197_v9 = vld [vmem:[%s195_s28 + $0x8] sm:$0xff]  ;;  %v198_v10 = vld [vmem:[%s195_s28 + $0x10] sm:$0xff]  ;;  %s1708_s13 = scalar_lea.hbm %s1707_s12, 40  ;;  %p1713_p0 = scmp.lt.s32.totalorder %s1707_s12, %s2239_s4 }
  0x19   : > { %598 = vmatpush.bf16.msra.mxu2 %v1579_v3  ;;  %v199_v11 = vld [vmem:[%s195_s28 + $0x18] sm:$0xff]  ;;  %v202_v12 = vpack.c.bf16 %v196_v8, %v196_v8  ;;  %v203_v13 = vpack.c.bf16 %v197_v9, %v197_v9  ;;  %v204_v15 = vpack.c.bf16 %v198_v10, %v198_v10  ;;  %v200_v17 = vld [vmem:[%s195_s28 + $0x20] sm:$0xff]  ;;  %v201_v18 = vld [vmem:[%s195_s28 + $0x28] sm:$0xff]  ;;  %p1709_p11 = scmp.ne.s32.totalorder %s1707_s12, %s1708_s13  ;;  %p1714_p1 = scmp.lt.s32.totalorder %s1712_s23, %s1708_s13 }
  0x1a   : > { %689 = vmatpush.bf16.msra.mxu3 %v1587_v5  ;;  %v205_v16 = vpack.c.bf16 %v199_v11, %v199_v11  ;;  %v206_v22 = vpack.c.bf16 %v200_v17, %v200_v17  ;;  %v207_v23 = vpack.c.bf16 %v201_v18, %v201_v18  ;;  %v1585_v25 = vld [vmem:[%s2236_s1 + $0xe0] sm:$0xff]  ;;  %v1584_v34 = vld [vmem:[%s2236_s1 + $0xd8] sm:$0xff]  ;;  %v1583_v41 = vld [vmem:[%s2236_s1 + $0xd0] sm:$0xff] }
  0x1b   : > { %v358_v20 = vunpack.c.l.b16 %v202_v12  ;;  %v1866_v21 = vunpack.c.l.b16 %v203_v13  ;;  %v1874_v26 = vunpack.c.l.b16 %v204_v15  ;;  %v1566_v42 = vld [vmem:[%s2236_s1 + $0x48] sm:$0xff]  ;;  %v1565_v52 = vld [vmem:[%s2236_s1 + $0x40] sm:$0xff]  ;;  %v1564_v57 = vld [vmem:[%s2236_s1 + $0x38] sm:$0xff]  ;;  %p1710_p12 = pnand %p1709_p11, %p1821_p5  ;;  %p1715_p2 = por %p1714_p1, %p1713_p0 }
  0x1c   : > { %1631 = vmatpush.bf16.msra.mxu1 %v1570_v6  ;;  %444 = vmatpush.bf16.msra.mxu0 %v1570_v6  ;;  %v1876_v27 = vunpack.c.l.b16 %v205_v16  ;;  %v1878_v28 = vunpack.c.l.b16 %v206_v22  ;;  %v1880_v29 = vunpack.c.l.b16 %v207_v23  ;;  %v1574_v46 = vld [vmem:[%s2236_s1 + $0x88] sm:$0xff]  ;;  %v1573_v58 = vld [vmem:[%s2236_s1 + $0x80] sm:$0xff]  ;;  %v1596_v61 = vld [vmem:[%s2236_s1 + $0x138] sm:$0xff] }
  0x1d   : > { %599 = vmatpush.bf16.msra.mxu2 %v1578_v7  ;;  %v1886_v31 = vpack.c.b16 %v1866_v21, %v358_v20  ;;  %v1582_v50 = vld [vmem:[%s2236_s1 + $0xc8] sm:$0xff]  ;;  %v1612_v62 = vld [vmem:[%s2236_s1 + $0x1b8] sm:$0xff]  ;;  %v1581_v1 = vld [vmem:[%s2236_s1 + $0xc0] sm:$0xff]  ;;  %p1711_p13 = pneg %p1710_p12 }
  0x1e   : > { %690 = vmatpush.bf16.msra.mxu3 %v1586_v14  ;;  %v1893_v33 = vpack.c.b16 %v1876_v27, %v1874_v26  ;;  %v1900_v35 = vpack.c.b16 %v1880_v29, %v1878_v28  ;;  %v1563_v4 = vld [vmem:[%s2236_s1 + $0x30] sm:$0xff]  ;;  %v1620_v6 = vld [vmem:[%s2236_s1 + $0x1f8] sm:$0xff]  ;;  %v1562_v10 = vld [vmem:[%s2236_s1 + $0x28] sm:$0xff] }
  0x1f   : > { %v1906_v37 = vshll.u32 %v1886_v31, 16  ;;  %v1924_v43 = vshrl.u32 %v1886_v31, 16  ;;  %v541_v59 = vrot.slane %v1886_v31, 1  ;;  %v1595_v7 = vld [vmem:[%s2236_s1 + $0x130] sm:$0xff]  ;;  %v1594_v12 = vld [vmem:[%s2236_s1 + $0x128] sm:$0xff]  ;;  %v1561_v14 = vld [vmem:[%s2236_s1 + $0x20] sm:$0xff]  ;;  %p1716_p3 = pnand %p1715_p2, %p1711_p13 }
  0x20   : > { %1632 = vmatpush.bf16.msra.mxu1 %v1569_v19  ;;  %445 = vmatpush.bf16.msra.mxu0 %v1569_v19  ;;  %v1912_v39 = vshll.u32 %v1893_v33, 16  ;;  %v1915_v40 = vshll.u32 %v1900_v35, 16  ;;  %v1928_v45 = vshrl.u32 %v1893_v33, 16  ;;  %v1936_v49 = vshrl.u32 %v1900_v35, 16  ;;  %v1611_v8 = vld [vmem:[%s2236_s1 + $0x1b0] sm:$0xff]  ;;  %v1610_v13 = vld [vmem:[%s2236_s1 + $0x1a8] sm:$0xff] }
  0x21   : > { %600 = vmatpush.bf16.msra.mxu2 %v1577_v24  ;;  %v373_v44 = vrot.slane %v1906_v37, 1  ;;  %v626_v51 = vrot.slane %v1924_v43, 1  ;;  %v627_v54 = vrot.slane %v1906_v37, 2  ;;  %v542_v60 = vrot.slane %v1893_v33, 1  ;;  %v1619_v11 = vld [vmem:[%s2236_s1 + $0x1f0] sm:$0xff]  ;;  %v1618_v15 = vld [vmem:[%s2236_s1 + $0x1e8] sm:$0xff] }
  0x22   : > { %691 = vmatpush.bf16.msra.mxu3 %v1585_v25  ;;  %v378_v47 = vrot.slane %v1912_v39, 1  ;;  %v386_v48 = vrot.slane %v1915_v40, 1  ;;  %v629_v55 = vrot.slane %v1928_v45, 1  ;;  %v630_v56 = vrot.slane %v1912_v39, 2  ;;  %v1593_v16 = vld [vmem:[%s2236_s1 + $0x120] sm:$0xff]  ;;  %v1560_v22 = vld [vmem:[%s2236_s1 + $0x18] sm:$0xff] }
  0x23   : > { %v374_v53 = vor.u32 %v373_v44, %v1924_v43  ;;  %v628_v2 = vor.u32 %v627_v54, %v626_v51  ;;  %v543_v5 = vsel %vm540_vm1, %v541_v59, %v542_v60  ;;  %v1609_v17 = vld [vmem:[%s2236_s1 + $0x1a0] sm:$0xff]  ;;  %v633_v19 = vrot.slane %v1936_v49, 1  ;;  %v1592_v24 = vld [vmem:[%s2236_s1 + $0x118] sm:$0xff]  ;;  %v1615_v51 = vld [vmem:[%s2236_s1 + $0x1d0] sm:$0xff] }
  0x24   : > { %1633 = vmatpush.bf16.msra.mxu1 %v1568_v30  ;;  %446 = vmatpush.bf16.msra.mxu0 %v1568_v30  ;;  %v390_v63 = vor.u32 %v1936_v49, %v386_v48  ;;  %v631_v3 = vor.u32 %v630_v56, %v629_v55  ;;  %v382_v18 = vor.u32 %v1928_v45, %v378_v47  ;;  %v634_v20 = vrot.slane %v1915_v40, 2  ;;  %v1608_v25 = vld [vmem:[%s2236_s1 + $0x198] sm:$0xff]  ;;  %v1589_v54 = vld [vmem:[%s2236_s1 + $0x100] sm:$0xff]  ;;  %v1614_v59 = vld [vmem:[%s2236_s1 + $0x1c8] sm:$0xff] }
  0x25   : > { %601 = vmatpush.bf16.msra.mxu2 %v1576_v32  ;;  %v379_v0 = vsel %vm367_vm0, %v374_v53, %v378_v47  ;;  %v544_v23 = vrot.slane %v1900_v35, 1  ;;  %v1558_v47 = vld [vmem:[%s2236_s1 + $0x8] sm:$0xff]  ;;  %v1604_v53 = vld [vmem:[%s2236_s1 + $0x178] sm:$0xff]  ;;  %v1605_v56 = vld [vmem:[%s2236_s1 + $0x180] sm:$0xff] }
  0x26   : > { %692 = vmatpush.bf16.msra.mxu3 %v1584_v34  ;;  %v632_v9 = vsel %vm625_vm2, %v628_v2, %v631_v3  ;;  %v387_v30 = vsel %vm367_vm0, %v382_v18, %v386_v48  ;;  %v635_v32 = vor.u32 %v634_v20, %v633_v19  ;;  %v1617_v34 = vld [vmem:[%s2236_s1 + $0x1e0] sm:$0xff]  ;;  %v1590_v48 = vld [vmem:[%s2236_s1 + $0x108] sm:$0xff]  ;;  %v1628_v55 = vld [vmem:[%s2236_s1 + $0x238] sm:$0xff]  ;;  %v802_v2 = vrot.slane %v1924_v43, 2 }
  0x27   : > { %v893_v18 = vrot.slane %v1886_v31, 3  ;;  %v894_v19 = vrot.slane %v1893_v33, 3  ;;  %v985_v20 = vrot.slane %v1936_v49, 3 }
  0x28   : > { %1634 = vmatpush.bf16.msra.mxu1 %v1567_v36  ;;  %447 = vmatpush.bf16.msra.mxu0 %v1567_v36  ;;  %v1559_v36 = vld [vmem:[%s2236_s1 + $0x10] sm:$0xff]  ;;  %v636_v44 = vsel %vm625_vm2, %v631_v3, %v635_v32  ;;  %v803_v3 = vrot.slane %v1906_v37, 3 }
  0x29   : > { %602 = vmatpush.bf16.msra.mxu2 %v1575_v38  ;;  %v545_v38 = vsel %vm540_vm1, %v542_v60, %v544_v23  ;;  %v1603_v60 = vld [vmem:[%s2236_s1 + $0x170] sm:$0xff] }
  0x2a   : > { %693 = vmatpush.bf16.msra.mxu3 %v1583_v41  ;;  %v1591_v41 = vld [vmem:[%s2236_s1 + $0x110] sm:$0xff] }
  0x2c   : > { %1635 = vmatpush.bf16.msra.mxu1 %v1566_v42  ;;  %448 = vmatpush.bf16.msra.mxu0 %v1566_v42  ;;  %v1607_v42 = vld [vmem:[%s2236_s1 + $0x190] sm:$0xff] }
  0x2d   : > { %603 = vmatpush.bf16.msra.mxu2 %v1574_v46  ;;  %v1616_v46 = vld [vmem:[%s2236_s1 + $0x1d8] sm:$0xff] }
  0x2e   : > { %694 = vmatpush.bf16.msra.mxu3 %v1582_v50  ;;  %v1606_v50 = vld [vmem:[%s2236_s1 + $0x188] sm:$0xff] }
  0x30   : > { %1636 = vmatpush.bf16.msra.mxu1 %v1565_v52  ;;  %449 = vmatpush.bf16.msra.mxu0 %v1565_v52  ;;  %v1557_v52 = vld [vmem:[%s2236_s1] sm:$0xff] }
  0x31   : > { %604 = vmatpush.bf16.msra.mxu2 %v1573_v58  ;;  %v718_v58 = vrot.slane %v1893_v33, 2 }
  0x32   : > { %695 = vmatpush.bf16.msra.mxu3 %v1581_v1  ;;  %v1626_v1 = vld [vmem:[%s2236_s1 + $0x228] sm:$0xff] }
  0x33   : > { %450 = vmatmul.bf16.vlgmr.msra.gmra.mxu0 %v379_v0  ;;  %460 = vmatmul.bf16.vlgmr.msra.gmra.mxu1 %v390_v63  ;;  %v1613_v63 = vld [vmem:[%s2236_s1 + $0x1c0] sm:$0xff]  ;;  %v1602_v0 = vld [vmem:[%s2236_s1 + $0x168] sm:$0xff] }
  0x34   : > { %517 = vmatpush.bf16.msrb.mxu1 %v1564_v57  ;;  %773 = vmatpush.bf16.msrb.mxu0 %v1596_v61  ;;  %v717_v57 = vrot.slane %v1886_v31, 2 }
  0x35   : > { %949 = vmatpush.bf16.msrb.mxu2 %v1612_v62  ;;  %696 = vmatmul.bf16.vlgmr.msra.gmra.mxu3 %v632_v9  ;;  %v1627_v62 = vld [vmem:[%s2236_s1 + $0x230] sm:$0xff] }
  0x36   : > { %605 = vmatmul.bf16.vlgmr.msra.gmra.mxu2 %v543_v5  ;;  %1040 = vmatpush.bf16.msrb.mxu3 %v1620_v6  ;;  %v719_v61 = vsel %vm716_vm3, %v717_v57, %v718_v58  ;;  %v1601_v5 = vld [vmem:[%s2236_s1 + $0x160] sm:$0xff]  ;;  %v806_v6 = vrot.slane %v1912_v39, 3 }
  0x38   : > { %518 = vmatpush.bf16.msrb.mxu1 %v1563_v4  ;;  %774 = vmatpush.bf16.msrb.mxu0 %v1595_v7  ;;  %v805_v4 = vrot.slane %v1928_v45, 2  ;;  %v804_v7 = vor.u32 %v803_v3, %v802_v2 }
  0x39   : > { %950 = vmatpush.bf16.msrb.mxu2 %v1611_v8  ;;  %v1625_v8 = vld [vmem:[%s2236_s1 + $0x220] sm:$0xff] }
  0x3a   : > { %1041 = vmatpush.bf16.msrb.mxu3 %v1619_v11  ;;  %v807_v9 = vor.u32 %v806_v6, %v805_v4 }
  0x3c   : > { %519 = vmatpush.bf16.msrb.mxu1 %v1562_v10  ;;  %775 = vmatpush.bf16.msrb.mxu0 %v1594_v12  ;;  %v1600_v10 = vld [vmem:[%s2236_s1 + $0x158] sm:$0xff]  ;;  %v808_v11 = vsel %vm801_vm4, %v804_v7, %v807_v9  ;;  %v720_v12 = vrot.slane %v1900_v35, 2 }
  0x3d   : > { %951 = vmatpush.bf16.msrb.mxu2 %v1610_v13  ;;  %v978_v13 = vrot.slane %v1924_v43, 3  ;;  %v1599_v43 = vld [vmem:[%s2236_s1 + $0x150] sm:$0xff] }
  0x3e   : > { %1042 = vmatpush.bf16.msrb.mxu3 %v1618_v15  ;;  %v981_v15 = vrot.slane %v1928_v45, 3 }
  0x40   : > { %520 = vmatpush.bf16.msrb.mxu1 %v1561_v14  ;;  %776 = vmatpush.bf16.msrb.mxu0 %v1593_v16  ;;  %v979_v14 = vrot.slane %v1906_v37, 4  ;;  %v982_v16 = vrot.slane %v1912_v39, 4  ;;  %v721_v37 = vsel %vm716_vm3, %v718_v58, %v720_v12 }
  0x41   : > { %952 = vmatpush.bf16.msrb.mxu2 %v1609_v17  ;;  %v1624_v17 = vld [vmem:[%s2236_s1 + $0x218] sm:$0xff] }
  0x42   : > { %1043 = vmatpush.bf16.msrb.mxu3 %v1617_v34  ;;  %v980_v39 = vor.u32 %v979_v14, %v978_v13  ;;  %v983_v45 = vor.u32 %v982_v16, %v981_v15  ;;  %v810_v34 = vrot.slane %v1915_v40, 3 }
  0x43   : > { %455 = vmatmul.bf16.gmra.mxu0 %v387_v30  ;;  %v1622_v30 = vld [vmem:[%s2236_s1 + $0x208] sm:$0xff] }
  0x44   : > { %521 = vmatpush.bf16.msrb.mxu1 %v1560_v22  ;;  %777 = vmatpush.bf16.msrb.mxu0 %v1592_v24  ;;  %v986_v22 = vrot.slane %v1915_v40, 4  ;;  %v465_v40 = vpack.c.b16 %v1878_v28, %v1878_v28 }
  0x45   : > { %953 = vmatpush.bf16.msrb.mxu2 %v1608_v25  ;;  %701 = vmatmul.bf16.gmra.mxu3 %v636_v44  ;;  %v984_v25 = vsel %vm977_vm6, %v980_v39, %v983_v45 }
  0x46   : > { %610 = vmatmul.bf16.gmra.mxu2 %v545_v38  ;;  %1044 = vmatpush.bf16.msrb.mxu3 %v1616_v46  ;;  %v987_v24 = vor.u32 %v986_v22, %v985_v20 }
  0x48   : > { %522 = vmatpush.bf16.msrb.mxu1 %v1559_v36  ;;  %778 = vmatpush.bf16.msrb.mxu0 %v1591_v41  ;;  %v1597_v36 = vld [vmem:[%s2236_s1 + $0x140] sm:$0xff]  ;;  %v988_v46 = vsel %vm977_vm6, %v983_v45, %v987_v24 }
  0x49   : > { %954 = vmatpush.bf16.msrb.mxu2 %v1607_v42  ;;  %v1621_v41 = vld [vmem:[%s2236_s1 + $0x200] sm:$0xff] }
  0x4a   : > { %1045 = vmatpush.bf16.msrb.mxu3 %v1615_v51 }
  0x4c   : > { %523 = vmatpush.bf16.msrb.mxu1 %v1558_v47  ;;  %779 = vmatpush.bf16.msrb.mxu0 %v1590_v48  ;;  %v1068_v47 = vpack.c.b16 %v1874_v26, %v1866_v21  ;;  %v1069_v48 = vpack.c.b16 %v1878_v28, %v1876_v27 }
  0x4d   : > { %955 = vmatpush.bf16.msrb.mxu2 %v1606_v50 }
  0x4e   : > { %1046 = vmatpush.bf16.msrb.mxu3 %v1614_v59 }
  0x50   : > { %524 = vmatpush.bf16.msrb.mxu1 %v1557_v52  ;;  %780 = vmatpush.bf16.msrb.mxu0 %v1589_v54 }
  0x51   : > { %956 = vmatpush.bf16.msrb.mxu2 %v1605_v56 }
  0x52   : > { %1047 = vmatpush.bf16.msrb.mxu3 %v1613_v63 }
  0x53   : > { %525 = vmatmul.bf16.vlgmr.msrb.gmra.mxu1 %v1886_v31  ;;  %781 = vmatmul.bf16.vlgmr.msrb.gmra.mxu0 %v719_v61  ;;  %v1623_v31 = vld [vmem:[%s2236_s1 + $0x210] sm:$0xff] }
  0x54   : > { %864 = vmatpush.bf16.msra.mxu1 %v1604_v53  ;;  %1122 = vmatpush.bf16.msra.mxu0 %v1628_v55 }
  0x55   : > { %1637 = vmatpush.bf16.msra.mxu2 %v1628_v55  ;;  %706 = vmatmul.bf16.gmra.mxu3 %v635_v32  ;;  %v809_v32 = vrot.slane %v1936_v49, 2  ;;  %v896_v49 = vrot.slane %v1900_v35, 3  ;;  %v1070_v35 = vpack.c.b16 %v1880_v29, %v1880_v29 }
  0x56   : > { %615 = vmatmul.bf16.gmra.mxu2 %v544_v23  ;;  %v895_v23 = vsel %vm892_vm5, %v893_v18, %v894_v19 }
  0x57   : > { %v811_v38 = vor.u32 %v810_v34, %v809_v32  ;;  %v897_v44 = vsel %vm892_vm5, %v894_v19, %v896_v49 }
  0x58   : > { %865 = vmatpush.bf16.msra.mxu1 %v1603_v60  ;;  %1123 = vmatpush.bf16.msra.mxu0 %v1627_v62 }
  0x59   : > { %1638 = vmatpush.bf16.msra.mxu2 %v1627_v62  ;;  %v812_v42 = vsel %vm801_vm4, %v807_v9, %v811_v38 }
  0x5c   : > { %866 = vmatpush.bf16.msra.mxu1 %v1602_v0  ;;  %1124 = vmatpush.bf16.msra.mxu0 %v1626_v1 }
  0x5d   : > { %1639 = vmatpush.bf16.msra.mxu2 %v1626_v1 }
  0x60   : > { %867 = vmatpush.bf16.msra.mxu1 %v1601_v5  ;;  %1125 = vmatpush.bf16.msra.mxu0 %v1625_v8 }
  0x61   : > { %1640 = vmatpush.bf16.msra.mxu2 %v1625_v8 }
  0x63   : > { %530 = vmatmul.bf16.gmra.mxu1 %v1893_v33  ;;  %v1598_v33 = vld [vmem:[%s2236_s1 + $0x148] sm:$0xff]  ;;  %786 = vmatmul.bf16.gmra.mxu0 %v721_v37 }
  0x64   : > { %868 = vmatpush.bf16.msra.mxu1 %v1600_v10  ;;  %1126 = vmatpush.bf16.msra.mxu0 %v1624_v17 }
  0x65   : > { %1641 = vmatpush.bf16.msra.mxu2 %v1624_v17  ;;  %1048 = vmatmul.bf16.vlgmr.msrb.gmra.mxu3 %v984_v25 }
  0x66   : > { %957 = vmatmul.bf16.vlgmr.msrb.gmra.mxu2 %v895_v23 }
  0x68   : > { %869 = vmatpush.bf16.msra.mxu1 %v1599_v43  ;;  %1127 = vmatpush.bf16.msra.mxu0 %v1623_v31 }
  0x69   : > { %1642 = vmatpush.bf16.msra.mxu2 %v1623_v31 }
  0x6c   : > { %870 = vmatpush.bf16.msra.mxu1 %v1598_v33  ;;  %1128 = vmatpush.bf16.msra.mxu0 %v1622_v30 }
  0x6d   : > { %1643 = vmatpush.bf16.msra.mxu2 %v1622_v30 }
  0x70   : > { %871 = vmatpush.bf16.msra.mxu1 %v1597_v36  ;;  %1129 = vmatpush.bf16.msra.mxu0 %v1621_v41 }
  0x71   : > { %1644 = vmatpush.bf16.msra.mxu2 %v1621_v41  ;;  %v2161_v41 = vld [vmem:[%s2237_s2] ss:$0 sm:$0xff] }
  0x73   : > { %535 = vmatmul.bf16.gmra.mxu1 %v465_v40  ;;  %791 = vmatmul.bf16.gmra.mxu0 %v720_v12 }
  0x75   : > { %1053 = vmatmul.bf16.gmra.mxu3 %v988_v46 }
  0x76   : > { %962 = vmatmul.bf16.gmra.mxu2 %v897_v44  ;;  %v2167_v44 = vld [vmem:[%s2238_s3] ss:$0 sm:$0xff] }
  0x83   : > { %872 = vmatmul.bf16.vlgmr.msra.gmra.mxu1 %v808_v11  ;;  %1130 = vmatmul.bf16.vlgmr.msra.gmra.mxu0 %v1068_v47 }
  0x85   : > { %1058 = vmatmul.bf16.gmra.mxu3 %v987_v24 }
  0x86   : > { %967 = vmatmul.bf16.gmra.mxu2 %v896_v49 }
  0x93   : > { %877 = vmatmul.bf16.gmra.mxu1 %v812_v42  ;;  %1135 = vmatmul.bf16.gmra.mxu0 %v1069_v48  ;;  %v2173_v48 = vld [vmem:[%s2238_s3 + $0x1] ss:$0 sm:$0xff] }
  0x96   : > { %1140 = vmatmul.bf16.vlgmr.msra.gmra.mxu2 %v1070_v35 }
  0xa3   : > { %882 = vmatmul.bf16.gmra.mxu1 %v811_v38 }
  0xb0   : > { %v451_v50 = vpop.f32.mrf.mxu0  ;;  %v461_v51 = vpop.f32.mrf.mxu1 }
  0xb8   : > { %v453_v53 = vpop.f32.mrf.mxu0  ;;  %v463_v54 = vpop.f32.mrf.mxu1 }
  0xb9   : > { %v606_v52 = vpop.f32.mrf.mxu2  ;;  %v697_v21 = vpop.f32.mrf.mxu3 }
  0xc0   : > { %v456_v55 = vpop.f32.mrf.mxu0 }
  0xc1   : > { %v608_v26 = vpop.f32.mrf.mxu2  ;;  %v699_v56 = vpop.f32.mrf.mxu3 }
  0xc8   : > { %v458_v58 = vpop.f32.mrf.mxu0 }
  0xc9   : > { %v611_v57 = vpop.f32.mrf.mxu2  ;;  %v702_v59 = vpop.f32.mrf.mxu3 }
  0xd0   : > { %v526_v27 = vpop.f32.mrf.mxu1  ;;  %v782_v29 = vpop.f32.mrf.mxu0 }
  0xd1   : > { %v527_v28 = vadd.f32 %v526_v27, %v451_v50  ;;  %v613_v60 = vpop.f32.mrf.mxu2  ;;  %v2152_v62 = vpop.f32.mrf.mxu3 }
  0xd3   : > { %v620_v61 = vadd.f32 %v606_v52, %v527_v28 }
  0xd5   : > { %v711_v20 = vadd.f32 %v697_v21, %v620_v61 }
  0xd7   : > { %v796_v33 = vadd.f32 %v782_v29, %v711_v20 }
  0xd8   : > { %v528_v63 = vpop.f32.mrf.mxu1  ;;  %v784_v3 = vpop.f32.mrf.mxu0 }
  0xd9   : > { %v529_v0 = vadd.f32 %v528_v63, %v453_v53  ;;  %v616_v1 = vpop.f32.mrf.mxu2  ;;  %v2154_v4 = vpop.f32.mrf.mxu3 }
  0xdb   : > { %v621_v2 = vadd.f32 %v608_v26, %v529_v0 }
  0xdd   : > { %v712_v32 = vadd.f32 %v699_v56, %v621_v2 }
  0xdf   : > { %v797_v40 = vadd.f32 %v784_v3, %v712_v32 }
  0xe0   : > { %v531_v5 = vpop.f32.mrf.mxu1  ;;  %v787_v9 = vpop.f32.mrf.mxu0 }
  0xe1   : > { %v532_v6 = vadd.f32 %v531_v5, %v456_v55  ;;  %v618_v7 = vpop.f32.mrf.mxu2  ;;  %v709_v10 = vpop.f32.mrf.mxu3 }
  0xe3   : > { %v622_v8 = vadd.f32 %v611_v57, %v532_v6 }
  0xe8   : > { %v533_v11 = vpop.f32.mrf.mxu1  ;;  %v789_v15 = vpop.f32.mrf.mxu0 }
  0xe9   : > { %v534_v12 = vadd.f32 %v533_v11, %v458_v58  ;;  %v958_v13 = vpop.f32.mrf.mxu2  ;;  %v1049_v16 = vpop.f32.mrf.mxu3 }
  0xeb   : > { %v623_v14 = vadd.f32 %v613_v60, %v534_v12 }
  0xed   : > { %v714_v61 = vadd.f32 %v2152_v62, %v623_v14 }
  0xef   : > { %v799_v5 = vadd.f32 %v789_v15, %v714_v61 }
  0xf0   : > { %v536_v17 = vpop.f32.mrf.mxu1  ;;  %v2156_v37 = vpop.f32.mrf.mxu0 }
  0xf1   : > { %v537_v18 = vadd.f32 %v536_v17, %v461_v51  ;;  %v960_v19 = vpop.f32.mrf.mxu2  ;;  %v1051_v39 = vpop.f32.mrf.mxu3  ;;  %v713_v51 = vadd.f32 %v702_v59, %v622_v8 }
  0xf3   : > { %v624_v43 = vadd.f32 %v616_v1, %v537_v18  ;;  %v798_v56 = vadd.f32 %v787_v9, %v713_v51 }
  0xf5   : > { %v715_v62 = vadd.f32 %v2154_v4, %v624_v43 }
  0xf7   : > { %v800_v15 = vadd.f32 %v2156_v37, %v715_v62 }
  0xf8   : > { %v538_v45 = vpop.f32.mrf.mxu1  ;;  %v794_v22 = vpop.f32.mrf.mxu0 }
  0xf9   : > { %v963_v31 = vpop.f32.mrf.mxu2  ;;  %v1054_v23 = vpop.f32.mrf.mxu3 }
 0x100   : > { %v873_v24 = vpop.f32.mrf.mxu1  ;;  %v1131_v36 = vpop.f32.mrf.mxu0 }
 0x101   : > { %v887_v25 = vadd.f32 %v873_v24, %v796_v33  ;;  %v965_v30 = vpop.f32.mrf.mxu2  ;;  %v1056_v42 = vpop.f32.mrf.mxu3 }
 0x103   : > { %v972_v34 = vadd.f32 %v958_v13, %v887_v25 }
 0x105   : > { %v1063_v38 = vadd.f32 %v1049_v16, %v972_v34 }
 0x107   : > { %v1145_v49 = vadd.f32 %v1131_v36, %v1063_v38 }
 0x108   : > { %v875_v46 = vpop.f32.mrf.mxu1  ;;  %v1133_v54 = vpop.f32.mrf.mxu0 }
 0x109   : > { %v1154_v47 = vadd.f32 %v2161_v41, %v1145_v49  ;;  %v888_v35 = vadd.f32 %v875_v46, %v797_v40  ;;  %v968_v50 = vpop.f32.mrf.mxu2  ;;  %v1059_v55 = vpop.f32.mrf.mxu3 }
 0x10b   : > { %v1161_v52 = vmul.f32 %v2167_v44, %v1154_v47  ;;  %v973_v53 = vadd.f32 %v960_v19, %v888_v35 }
 0x10d   : > { %v1168_v21 = vadd.f32 %v2173_v48, %v1161_v52  ;;  %v1064_v26 = vadd.f32 %v1051_v39, %v973_v53 }
 0x10f   : > { %v1173_v57 = vmax.f32 %v1168_v21, 0.0  ;;  %v1146_v58 = vadd.f32 %v1133_v54, %v1064_v26 }
 0x110   : > { %v878_v27 = vpop.f32.mrf.mxu1  ;;  %v1136_v0 = vpop.f32.mrf.mxu0 }
 0x111   : > { %1178 = vst [vmem:[%s2179_s5] sm:$0xff] %v1173_v57  ;;  %v1155_v28 = vadd.f32 %v2161_v41, %v1146_v58  ;;  %v889_v59 = vadd.f32 %v878_v27, %v798_v56  ;;  %v970_v60 = vpop.f32.mrf.mxu2  ;;  %v1061_v3 = vpop.f32.mrf.mxu3 }
 0x113   : > { %v1162_v29 = vmul.f32 %v2167_v44, %v1155_v28  ;;  %v974_v63 = vadd.f32 %v963_v31, %v889_v59 }
 0x115   : > { %v1169_v1 = vadd.f32 %v2173_v48, %v1162_v29  ;;  %v1065_v2 = vadd.f32 %v1054_v23, %v974_v63 }
 0x117   : > { %v1174_v6 = vmax.f32 %v1169_v1, 0.0  ;;  %v1147_v7 = vadd.f32 %v1136_v0, %v1065_v2 }
 0x118   : > { %v880_v8 = vpop.f32.mrf.mxu1  ;;  %v1138_v14 = vpop.f32.mrf.mxu0 }
 0x119   : > { %1179 = vst [vmem:[%s2179_s5 + $0x8] sm:$0xff] %v1174_v6  ;;  %v1156_v9 = vadd.f32 %v2161_v41, %v1147_v7  ;;  %v890_v10 = vadd.f32 %v880_v8, %v799_v5  ;;  %v1141_v11 = vpop.f32.mrf.mxu2 }
 0x11b   : > { %v1163_v12 = vmul.f32 %v2167_v44, %v1156_v9  ;;  %v975_v13 = vadd.f32 %v965_v30, %v890_v10 }
 0x11d   : > { %v1170_v16 = vadd.f32 %v2173_v48, %v1163_v12  ;;  %v1066_v17 = vadd.f32 %v1056_v42, %v975_v13 }
 0x11f   : > { %v1175_v18 = vmax.f32 %v1170_v16, 0.0  ;;  %v1148_v19 = vadd.f32 %v1138_v14, %v1066_v17 }
 0x120   : > { %v883_v39 = vpop.f32.mrf.mxu1 }
 0x121   : > { %1180 = vst [vmem:[%s2179_s5 + $0x10] sm:$0xff] %v1175_v18  ;;  %v1157_v45 = vadd.f32 %v2161_v41, %v1148_v19  ;;  %v891_v31 = vadd.f32 %v883_v39, %v800_v15  ;;  %v1143_v4 = vpop.f32.mrf.mxu2 }
 0x123   : > { %v1164_v43 = vmul.f32 %v2167_v44, %v1157_v45  ;;  %v976_v20 = vadd.f32 %v968_v50, %v891_v31 }
 0x125   : > { %v1171_v22 = vadd.f32 %v2173_v48, %v1164_v43  ;;  %v1067_v23 = vadd.f32 %v1059_v55, %v976_v20 }
 0x127   : > { %v1176_v37 = vmax.f32 %v1171_v22, 0.0  ;;  %v1149_v33 = vadd.f32 %v1141_v11, %v1067_v23 }
 0x128   : > { %v885_v24 = vpop.f32.mrf.mxu1 }
 0x129   : > { %1181 = vst [vmem:[%s2179_s5 + $0x18] sm:$0xff] %v1176_v37  ;;  %v1158_v25 = vadd.f32 %v2161_v41, %v1149_v33 }
 0x12b   : > { %v1165_v30 = vmul.f32 %v2167_v44, %v1158_v25 }
 0x12d   : > { %v1172_v32 = vadd.f32 %v2173_v48, %v1165_v30 }
 0x12f   : > { %v1177_v34 = vmax.f32 %v1172_v32, 0.0 }
 0x131   : > { %1182 = vst [vmem:[%s2179_s5 + $0x20] sm:$0xff] %v1177_v34 }
 0x132   : > { %1719 = shalt.err (!%p1716_p3)
}
 0x133   : > { %s1756_s22 = smov 128   ;;  %s1757_s29 = smov 8  }
 0x134   : > { %1648 = dma.vmem_to_hbm [thread:$0]  (%p1821_p5), %s1197_s10, 640, %s1199_s19, %s1184_s11, %s1756_s22, %s1756_s22, %s1757_s29  }
 0x135 PF: > { %p1654_p4 = scmp.ge.s32.totalorder %s1754_s18, 2  ;;  %s1213_s30 = sand.u32 1, %s1742_s15  }
 0x136   : > { %s1214_s5 = scalar_lea.sflag [#allocation3], %s1213_s30 }
 0x137   : > { %p1651_p7 = pnand %p1654_p4, %p1825_p6 }
 0x139   : > { %p1652_p8 = pneg %p1651_p7 }
 0x13b   : > { %1737 = dma.done.wait (%p1652_p8), %s1214_s5, 640  }
 0x13c   : > { %1739 = vsyncadd (%p1652_p8), %s1214_s5, 4294966656  ;;  %p14_p9 = scmp.ge.s32.totalorder %s1808_s21, 4   ;;  %s2242_s15 = smov %s1746_s16 }
 0x13d   : > { %s2243_s16 = smov %s1750_s17  ;;  %s2244_s17 = smov %s1819_s24 }
 0x13e   : > { %s2245_s18 = smov %s1808_s21  ;;  %16 = sbr.rel (!%p14_p9) target bundleno = 3 (0x3), region = 71 }
 0x143   :  { %1220 = vsyncpa [#allocation3], 1 }
 0x144   :  { %1222 = vsyncpa [#allocation3 + $0x1], 1 }

</bundles_post_ra>
